<compile_context>
chip_gen: v7x
topology: tpu7x:2x2x1
jax: 0.10.0
libtpu: 0.0.40
codegen_flags: <defaults>
</compile_context>

<pallas_src>
import functools
import math

import jax
import jax.numpy as jnp
from jax.experimental import pallas as pl
from jax.experimental.pallas import tpu as pltpu

LOG_STD_MIN = -20.0
LOG_STD_MAX = 2.0

_SINGLE_BUFFER_MIN_BYTES = 1 << 20   # only single-buffer big resident operands


def _softplus(x):
    # Single-branch numerically stable softplus: one exp + one log1p per element.
    return jnp.maximum(x, 0.0) + jnp.log1p(jnp.exp(-jnp.abs(x)))


def _mlp_estimator_kernel(x_ref,
                          w1_ref, b1_ref,
                          w2_ref, b2_ref,
                          w3_ref, b3_ref,
                          w4_ref, b4_ref,
                          out_ref):
    # ---- 4-layer MLP: bf16 MXU operands, f32 accumulation + ReLU ------------
    x = x_ref[...].astype(w1_ref.dtype)            # f32 -> bf16 in vregs
    h = jnp.dot(x, w1_ref[...], preferred_element_type=jnp.float32) + b1_ref[...]
    h = jnp.maximum(h, 0.0)
    h = jnp.dot(h.astype(w2_ref.dtype), w2_ref[...],
                preferred_element_type=jnp.float32) + b2_ref[...]
    h = jnp.maximum(h, 0.0)
    h = jnp.dot(h.astype(w3_ref.dtype), w3_ref[...],
                preferred_element_type=jnp.float32) + b3_ref[...]
    h = jnp.maximum(h, 0.0)
    out = jnp.dot(h.astype(w4_ref.dtype), w4_ref[...],
                  preferred_element_type=jnp.float32) + b4_ref[...]   # (bt, 2*zeta)

    # ---- epilogue: clamp log_std with double softplus, exp, per-lane select --
    # Keep raw values on the mean lanes (< zeta) and the transformed values on
    # the std lanes — a pure VPU select, no cross-lane slice/shift in-kernel.
    zeta = out.shape[-1] // 2
    ls = LOG_STD_MAX - _softplus(LOG_STD_MAX - out)
    ls = LOG_STD_MIN + _softplus(ls - LOG_STD_MIN)
    std = jnp.exp(ls)
    lane = jax.lax.broadcasted_iota(jnp.int32, out.shape, 1)
    out_ref[...] = jnp.where(lane < zeta, out, std).astype(out_ref.dtype)


def _round_up(x, m):
    return ((x + m - 1) // m) * m


@functools.lru_cache(maxsize=1)
def _vmem_capacity_bytes():
    try:
        return int(pltpu.get_tpu_info().vmem_capacity_bytes)
    except Exception:
        return 64 << 20        # conservative (v7x-sized) fallback


def _choose_batch_tile(B, big_vmem):
    if B <= 8:
        return B                                   # single tiny full-dim block
    if big_vmem:                                   # v5e/v6e: 1 TC -> fewest, biggest steps
        return B if B <= 2048 else 2048
    # v7x: >= 2 grid steps so ("parallel",) shards across both TensorCores
    return min(_round_up(pl.cdiv(B, 2), 8), 1024)


def _resident_spec(shape, dtype):
    """BlockSpec for a grid-invariant (VMEM-resident) operand.

    Large resident operands request single buffering so scaled-up H doesn't pay
    2x VMEM for blocks whose index_map never changes; tiny ones keep defaults.
    """
    index_map = lambda i: (0,) * len(shape)
    nbytes = math.prod(shape) * jnp.dtype(dtype).itemsize
    if nbytes >= _SINGLE_BUFFER_MIN_BYTES:
        try:
            return pl.BlockSpec(shape, index_map, pipeline_mode=pl.Buffered(1))
        except Exception:          # older Pallas without pipeline_mode/Buffered
            pass
    return pl.BlockSpec(shape, index_map)


@functools.partial(jax.jit, static_argnames=("zeta_size",))
def mlp_estimator_forward(obs, act, params, *, zeta_size):
    """obs: (T, B, obs_size), act: (T, B, act_size) -> (mean, std), each (B, zeta_size)."""
    T, B, obs_size = obs.shape
    act_size = act.shape[-1]
    w1, b1, w2, b2, w3, b3, w4, b4 = params
    input_size = T * (obs_size + act_size)
    H = w2.shape[0]
    out_width = 2 * zeta_size

    # PyTorch glue cat(-1)->transpose(0,1)->flatten(1) as ONE cheap fused XLA
    # copy in the wrapper (a few KB of HLO); the kernel then does a single
    # lane-dense K=input_size matmul against the original W1.  Activations stay
    # f32 in HBM — the bf16 cast happens in-kernel, in vregs.
    x = jnp.concatenate((obs, act), axis=-1)            # (T, B, obs+act)
    x = jnp.transpose(x, (1, 0, 2)).reshape(B, input_size)

    big_vmem = _vmem_capacity_bytes() > (96 << 20)      # v5e/v6e 128 MiB vs v7x 64 MiB
    B_TILE = _choose_batch_tile(B, big_vmem)
    grid = (pl.cdiv(B, B_TILE),)

    # Cost hint for the XLA scheduler.
    flops = 2 * B * (input_size * H + 2 * H * H + H * out_width)
    transcendentals = 5 * B * out_width
    bytes_accessed = (x.size * 4
                      + (w1.size + w2.size + w3.size + w4.size) * 2
                      + (b1.size + b2.size + b3.size + b4.size) * 4
                      + B * out_width * 4)

    # VMEM budget: resident weights + double-buffered activation/output tiles
    # (lane-padded to 128 for the estimate), with headroom; per-generation cap
    # (<= 48 MiB on v7x, <= 100 MiB on v5e/v6e) leaves compiler scratch room.
    lane_pad = lambda n: max(_round_up(n, 128), 128)
    resident = ((w1.size + w2.size + w3.size + w4.size) * 2
                + (b1.size + b2.size + b3.size + b4.size) * 4)
    streamed = 2 * B_TILE * (lane_pad(input_size) + lane_pad(out_width)) * 4
    vmem_cap = (100 << 20) if big_vmem else (48 << 20)
    vmem_limit = int(min(max(4 * (resident + streamed), 4 << 20), vmem_cap))

    in_specs = [
        pl.BlockSpec((B_TILE, input_size), lambda i: (i, 0)),   # streamed activations
        _resident_spec((input_size, H), w1.dtype),
        _resident_spec((1, H), b1.dtype),
        _resident_spec((H, H), w2.dtype),
        _resident_spec((1, H), b2.dtype),
        _resident_spec((H, H), w3.dtype),
        _resident_spec((1, H), b3.dtype),
        _resident_spec((H, out_width), w4.dtype),
        _resident_spec((1, out_width), b4.dtype),
    ]
    out_specs = pl.BlockSpec((B_TILE, out_width), lambda i: (i, 0))

    out = pl.pallas_call(
        _mlp_estimator_kernel,
        out_shape=jax.ShapeDtypeStruct((B, out_width), jnp.float32),
        grid=grid,
        in_specs=in_specs,
        out_specs=out_specs,
        compiler_params=pltpu.CompilerParams(
            dimension_semantics=("parallel",),      # megacore sharding on v7x
            vmem_limit_bytes=vmem_limit),
        cost_estimate=pl.CostEstimate(
            flops=flops, transcendentals=transcendentals,
            bytes_accessed=bytes_accessed),
    )(x, w1, b1, w2, b2, w3, b3, w4, b4)

    # Split the lane-dense slab outside the kernel (cheap XLA slices).
    return out[:, :zeta_size], out[:, zeta_size:]


def init_params(key, input_size, hidden_size, zeta_size):
    """Torch-equivalent Linear init; weights stored as (in, out), biases as (1, out)."""
    dims = [(input_size, hidden_size),
            (hidden_size, hidden_size),
            (hidden_size, hidden_size),
            (hidden_size, 2 * zeta_size)]
    params = []
    for (fan_in, fan_out) in dims:
        key, kw, kb = jax.random.split(key, 3)
        bound = 1.0 / jnp.sqrt(float(fan_in))
        w = jax.random.uniform(kw, (fan_in, fan_out), jnp.float32, -bound, bound)
        b = jax.random.uniform(kb, (1, fan_out), jnp.float32, -bound, bound)
        params.extend([w, b])
    return tuple(params)


def prepare_params(raw_params):
    """One-time offline conversion: bf16 matmul weights, f32 biases.

    W1 stays in the original (T*(obs+act), H) layout — the wrapper presents the
    activations in exactly the cat->transpose->flatten order, so no split is
    needed.  NOTE: bf16 operands are an intentional precision trade vs the f32
    PyTorch module (f32 accumulation is preserved).
    """
    w1, b1, w2, b2, w3, b3, w4, b4 = raw_params
    bf = lambda w: w.astype(jnp.bfloat16)
    f32 = lambda b: b.astype(jnp.float32)
    return (bf(w1), f32(b1), bf(w2), f32(b2), bf(w3), f32(b3), bf(w4), f32(b4))


def reference_forward(obs, act, raw_params, *, zeta_size):
    """Plain-JAX reference mirroring the PyTorch module (same bf16 operand quantization)."""
    w1, b1, w2, b2, w3, b3, w4, b4 = raw_params
    B = obs.shape[1]
    x = jnp.concatenate((obs, act), -1)
    x = jnp.transpose(x, (1, 0, 2)).reshape(B, -1)

    def lin(h, w, b):
        return jnp.dot(h.astype(jnp.bfloat16), w.astype(jnp.bfloat16),
                       preferred_element_type=jnp.float32) + b

    h = jnp.maximum(lin(x, w1, b1), 0.0)
    h = jnp.maximum(lin(h, w2, b2), 0.0)
    h = jnp.maximum(lin(h, w3, b3), 0.0)
    out = lin(h, w4, b4)
    mean, log_std = out[:, :zeta_size], out[:, zeta_size:]
    log_std = LOG_STD_MAX - _softplus(LOG_STD_MAX - log_std)
    log_std = LOG_STD_MIN + _softplus(log_std - LOG_STD_MIN)
    return mean, jnp.exp(log_std)


if __name__ == "__main__":
    # Small shapes consistent with the module's forward.
    obs_size = 4
    act_size = 4
    zeta_size = 4
    seq_len = 8     # T
    batch = 2       # B
    hidden_size = 32
    input_size = (obs_size + act_size) * seq_len

    key = jax.random.PRNGKey(0)
    k_obs, k_act, k_params = jax.random.split(key, 3)

    obs = jax.random.normal(k_obs, (seq_len, batch, obs_size), jnp.float32)
    act = jax.random.normal(k_act, (seq_len, batch, act_size), jnp.float32)
    raw_params = init_params(k_params, input_size, hidden_size, zeta_size)
    params = prepare_params(raw_params)

    mean, std = mlp_estimator_forward(obs, act, params, zeta_size=zeta_size)
    jax.block_until_ready((mean, std))

    # Sanity check against a plain-JAX reference with identical quantization.
    mean_ref, std_ref = reference_forward(obs, act, raw_params, zeta_size=zeta_size)

    assert mean.shape == (batch, zeta_size)
    assert std.shape == (batch, zeta_size)
    assert bool(jnp.all(std > 0.0))
    assert bool(jnp.allclose(mean, mean_ref, rtol=1e-3, atol=1e-4))
    assert bool(jnp.allclose(std, std_ref, rtol=1e-3, atol=1e-4))

    print("KERNEL_OK")
</pallas_src>

<mosaic_0001>
module attributes {stable_mosaic.version = 11 : i64} {
  func.func @_mlp_estimator_kernel(%arg0: i32, %arg1: memref<2x64xf32, #tpu.memory_space<vmem>>, %arg2: memref<64x32xbf16, #tpu.memory_space<vmem>>, %arg3: memref<1x32xf32, #tpu.memory_space<vmem>>, %arg4: memref<32x32xbf16, #tpu.memory_space<vmem>>, %arg5: memref<1x32xf32, #tpu.memory_space<vmem>>, %arg6: memref<32x32xbf16, #tpu.memory_space<vmem>>, %arg7: memref<1x32xf32, #tpu.memory_space<vmem>>, %arg8: memref<32x8xbf16, #tpu.memory_space<vmem>>, %arg9: memref<1x8xf32, #tpu.memory_space<vmem>>, %arg10: memref<2x8xf32, #tpu.memory_space<vmem>>) attributes {dimension_semantics = [#tpu.dimension_semantics<parallel>], iteration_bounds = array<i64: 1>, scalar_prefetch = 0 : i64, scratch_operands = 0 : i64, tpu.core_type = #tpu.core_type<tc>, window_params = [{transform_indices = @transform_0, window_bounds = array<i64: 2, 64>}, {pipeline_mode = #tpu.pipeline_mode<synchronous>, transform_indices = @transform_1, window_bounds = array<i64: 64, 32>}, {pipeline_mode = #tpu.pipeline_mode<synchronous>, transform_indices = @transform_2, window_bounds = array<i64: 1, 32>}, {pipeline_mode = #tpu.pipeline_mode<synchronous>, transform_indices = @transform_3, window_bounds = array<i64: 32, 32>}, {pipeline_mode = #tpu.pipeline_mode<synchronous>, transform_indices = @transform_4, window_bounds = array<i64: 1, 32>}, {pipeline_mode = #tpu.pipeline_mode<synchronous>, transform_indices = @transform_5, window_bounds = array<i64: 32, 32>}, {pipeline_mode = #tpu.pipeline_mode<synchronous>, transform_indices = @transform_6, window_bounds = array<i64: 1, 32>}, {pipeline_mode = #tpu.pipeline_mode<synchronous>, transform_indices = @transform_7, window_bounds = array<i64: 32, 8>}, {pipeline_mode = #tpu.pipeline_mode<synchronous>, transform_indices = @transform_8, window_bounds = array<i64: 1, 8>}, {transform_indices = @transform_9, window_bounds = array<i64: 2, 8>}]} {
    %c0 = arith.constant 0 : index
    %c0_0 = arith.constant 0 : index
    %0 = vector.load %arg1[%c0, %c0_0] : memref<2x64xf32, #tpu.memory_space<vmem>>, vector<2x64xf32>
    %1 = arith.truncf %0 : vector<2x64xf32> to vector<2x64xbf16>
    %c0_1 = arith.constant 0 : index
    %c0_2 = arith.constant 0 : index
    %2 = vector.load %arg2[%c0_1, %c0_2] : memref<64x32xbf16, #tpu.memory_space<vmem>>, vector<64x32xbf16>
    %cst = arith.constant dense<0.000000e+00> : vector<2x32xf32>
    %3 = tpu.matmul %1, %2, %cst {dimension_numbers = #tpu.dot_dimension_numbers<[1], [0], [0], [1], [0, 0, 1, 1], [], []>} : vector<2x64xbf16>, vector<64x32xbf16>, vector<2x32xf32> -> vector<2x32xf32>
    %c0_3 = arith.constant 0 : index
    %c0_4 = arith.constant 0 : index
    %4 = vector.load %arg3[%c0_3, %c0_4] : memref<1x32xf32, #tpu.memory_space<vmem>>, vector<1x32xf32>
    %5 = vector.broadcast %4 : vector<1x32xf32> to vector<2x32xf32>
    %6 = arith.addf %3, %5 : vector<2x32xf32>
    %cst_5 = arith.constant 0.000000e+00 : f32
    %7 = vector.broadcast %cst_5 : f32 to vector<2x32xf32>
    %8 = arith.maximumf %6, %7 : vector<2x32xf32>
    %9 = arith.truncf %8 : vector<2x32xf32> to vector<2x32xbf16>
    %c0_6 = arith.constant 0 : index
    %c0_7 = arith.constant 0 : index
    %10 = vector.load %arg4[%c0_6, %c0_7] : memref<32x32xbf16, #tpu.memory_space<vmem>>, vector<32x32xbf16>
    %cst_8 = arith.constant dense<0.000000e+00> : vector<2x32xf32>
    %11 = tpu.matmul %9, %10, %cst_8 {dimension_numbers = #tpu.dot_dimension_numbers<[1], [0], [0], [1], [0, 0, 1, 1], [], []>} : vector<2x32xbf16>, vector<32x32xbf16>, vector<2x32xf32> -> vector<2x32xf32>
    %c0_9 = arith.constant 0 : index
    %c0_10 = arith.constant 0 : index
    %12 = vector.load %arg5[%c0_9, %c0_10] : memref<1x32xf32, #tpu.memory_space<vmem>>, vector<1x32xf32>
    %13 = vector.broadcast %12 : vector<1x32xf32> to vector<2x32xf32>
    %14 = arith.addf %11, %13 : vector<2x32xf32>
    %cst_11 = arith.constant 0.000000e+00 : f32
    %15 = vector.broadcast %cst_11 : f32 to vector<2x32xf32>
    %16 = arith.maximumf %14, %15 : vector<2x32xf32>
    %17 = arith.truncf %16 : vector<2x32xf32> to vector<2x32xbf16>
    %c0_12 = arith.constant 0 : index
    %c0_13 = arith.constant 0 : index
    %18 = vector.load %arg6[%c0_12, %c0_13] : memref<32x32xbf16, #tpu.memory_space<vmem>>, vector<32x32xbf16>
    %cst_14 = arith.constant dense<0.000000e+00> : vector<2x32xf32>
    %19 = tpu.matmul %17, %18, %cst_14 {dimension_numbers = #tpu.dot_dimension_numbers<[1], [0], [0], [1], [0, 0, 1, 1], [], []>} : vector<2x32xbf16>, vector<32x32xbf16>, vector<2x32xf32> -> vector<2x32xf32>
    %c0_15 = arith.constant 0 : index
    %c0_16 = arith.constant 0 : index
    %20 = vector.load %arg7[%c0_15, %c0_16] : memref<1x32xf32, #tpu.memory_space<vmem>>, vector<1x32xf32>
    %21 = vector.broadcast %20 : vector<1x32xf32> to vector<2x32xf32>
    %22 = arith.addf %19, %21 : vector<2x32xf32>
    %cst_17 = arith.constant 0.000000e+00 : f32
    %23 = vector.broadcast %cst_17 : f32 to vector<2x32xf32>
    %24 = arith.maximumf %22, %23 : vector<2x32xf32>
    %25 = arith.truncf %24 : vector<2x32xf32> to vector<2x32xbf16>
    %c0_18 = arith.constant 0 : index
    %c0_19 = arith.constant 0 : index
    %26 = vector.load %arg8[%c0_18, %c0_19] : memref<32x8xbf16, #tpu.memory_space<vmem>>, vector<32x8xbf16>
    %cst_20 = arith.constant dense<0.000000e+00> : vector<2x8xf32>
    %27 = tpu.matmul %25, %26, %cst_20 {dimension_numbers = #tpu.dot_dimension_numbers<[1], [0], [0], [1], [0, 0, 1, 1], [], []>} : vector<2x32xbf16>, vector<32x8xbf16>, vector<2x8xf32> -> vector<2x8xf32>
    %c0_21 = arith.constant 0 : index
    %c0_22 = arith.constant 0 : index
    %28 = vector.load %arg9[%c0_21, %c0_22] : memref<1x8xf32, #tpu.memory_space<vmem>>, vector<1x8xf32>
    %29 = vector.broadcast %28 : vector<1x8xf32> to vector<2x8xf32>
    %30 = arith.addf %27, %29 : vector<2x8xf32>
    %cst_23 = arith.constant 2.000000e+00 : f32
    %31 = vector.broadcast %cst_23 : f32 to vector<2x8xf32>
    %32 = arith.subf %31, %30 : vector<2x8xf32>
    %cst_24 = arith.constant 0.000000e+00 : f32
    %33 = vector.broadcast %cst_24 : f32 to vector<2x8xf32>
    %34 = arith.maximumf %32, %33 : vector<2x8xf32>
    %35 = math.absf %32 : vector<2x8xf32>
    %cst_25 = arith.constant 0.000000e+00 : f32
    %36 = vector.broadcast %cst_25 : f32 to vector<2x8xf32>
    %37 = arith.subf %36, %35 : vector<2x8xf32>
    %38 = math.exp %37 : vector<2x8xf32>
    %39 = math.log1p %38 : vector<2x8xf32>
    %40 = arith.addf %34, %39 : vector<2x8xf32>
    %cst_26 = arith.constant 2.000000e+00 : f32
    %41 = vector.broadcast %cst_26 : f32 to vector<2x8xf32>
    %42 = arith.subf %41, %40 : vector<2x8xf32>
    %cst_27 = arith.constant -2.000000e+01 : f32
    %43 = vector.broadcast %cst_27 : f32 to vector<2x8xf32>
    %44 = arith.subf %42, %43 : vector<2x8xf32>
    %cst_28 = arith.constant 0.000000e+00 : f32
    %45 = vector.broadcast %cst_28 : f32 to vector<2x8xf32>
    %46 = arith.maximumf %44, %45 : vector<2x8xf32>
    %47 = math.absf %44 : vector<2x8xf32>
    %cst_29 = arith.constant 0.000000e+00 : f32
    %48 = vector.broadcast %cst_29 : f32 to vector<2x8xf32>
    %49 = arith.subf %48, %47 : vector<2x8xf32>
    %50 = math.exp %49 : vector<2x8xf32>
    %51 = math.log1p %50 : vector<2x8xf32>
    %52 = arith.addf %46, %51 : vector<2x8xf32>
    %cst_30 = arith.constant -2.000000e+01 : f32
    %53 = vector.broadcast %cst_30 : f32 to vector<2x8xf32>
    %54 = arith.addf %53, %52 : vector<2x8xf32>
    %55 = math.exp %54 : vector<2x8xf32>
    %56 = tpu.iota {dimensions = array<i32: 1>} : vector<2x8xi32>
    %c4_i32 = arith.constant 4 : i32
    %57 = vector.broadcast %c4_i32 : i32 to vector<2x8xi32>
    %58 = arith.cmpi slt, %56, %57 : vector<2x8xi32>
    %59 = arith.select %58, %30, %55 : vector<2x8xi1>, vector<2x8xf32>
    %c0_31 = arith.constant 0 : index
    %c0_32 = arith.constant 0 : index
    %60 = vector.load %arg10[%c0_31, %c0_32] : memref<2x8xf32, #tpu.memory_space<vmem>>, vector<2x8xf32>
    tpu.vector_store %arg10[%c0_31, %c0_32], %59 {strides = array<i32>} : memref<2x8xf32, #tpu.memory_space<vmem>>, vector<2x8xf32>,
    return
  }
  func.func @transform_0(%arg0: i32) -> (i32, i32) {
    %c0_i32 = arith.constant 0 : i32
    %c0_i32_0 = arith.constant 0 : i32
    return %arg0, %c0_i32 : i32, i32
  }
  func.func @transform_1(%arg0: i32) -> (i32, i32) {
    %c0_i32 = arith.constant 0 : i32
    %c0_i32_0 = arith.constant 0 : i32
    %c0_i32_1 = arith.constant 0 : i32
    return %c0_i32, %c0_i32_0 : i32, i32
  }
  func.func @transform_2(%arg0: i32) -> (i32, i32) {
    %c0_i32 = arith.constant 0 : i32
    %c0_i32_0 = arith.constant 0 : i32
    %c0_i32_1 = arith.constant 0 : i32
    return %c0_i32, %c0_i32_0 : i32, i32
  }
  func.func @transform_3(%arg0: i32) -> (i32, i32) {
    %c0_i32 = arith.constant 0 : i32
    %c0_i32_0 = arith.constant 0 : i32
    %c0_i32_1 = arith.constant 0 : i32
    return %c0_i32, %c0_i32_0 : i32, i32
  }
  func.func @transform_4(%arg0: i32) -> (i32, i32) {
    %c0_i32 = arith.constant 0 : i32
    %c0_i32_0 = arith.constant 0 : i32
    %c0_i32_1 = arith.constant 0 : i32
    return %c0_i32, %c0_i32_0 : i32, i32
  }
  func.func @transform_5(%arg0: i32) -> (i32, i32) {
    %c0_i32 = arith.constant 0 : i32
    %c0_i32_0 = arith.constant 0 : i32
    %c0_i32_1 = arith.constant 0 : i32
    return %c0_i32, %c0_i32_0 : i32, i32
  }
  func.func @transform_6(%arg0: i32) -> (i32, i32) {
    %c0_i32 = arith.constant 0 : i32
    %c0_i32_0 = arith.constant 0 : i32
    %c0_i32_1 = arith.constant 0 : i32
    return %c0_i32, %c0_i32_0 : i32, i32
  }
  func.func @transform_7(%arg0: i32) -> (i32, i32) {
    %c0_i32 = arith.constant 0 : i32
    %c0_i32_0 = arith.constant 0 : i32
    %c0_i32_1 = arith.constant 0 : i32
    return %c0_i32, %c0_i32_0 : i32, i32
  }
  func.func @transform_8(%arg0: i32) -> (i32, i32) {
    %c0_i32 = arith.constant 0 : i32
    %c0_i32_0 = arith.constant 0 : i32
    %c0_i32_1 = arith.constant 0 : i32
    return %c0_i32, %c0_i32_0 : i32, i32
  }
  func.func @transform_9(%arg0: i32) -> (i32, i32) {
    %c0_i32 = arith.constant 0 : i32
    %c0_i32_0 = arith.constant 0 : i32
    return %arg0, %c0_i32 : i32, i32
  }
}

</mosaic_0001>

<bundles_post_ra>
// kernel: mlp_estimator_forward.1
= control target key start
LH: loop header
LB: loop body
LE: loop exit
PB: predicated region body
PF: predicated region fallthrough
CT: control target
= control target key end

     0   :  { %v460_v0 = vmov 0.0   ;;  %vm461_vm0 = vmmov 0   ;;  %vm74_vm1 = vcmask 523264   ;;  %vm143_vm2 = vcmask 261120   ;;  %s567_s1 = inlined_call_operand.vmem [shape: bf16[64,32], index: 1, kind: input, shape index: {}]   ;;  %s568_s0 = inlined_call_operand.vmem [shape: f32[2,64], index: 0, kind: input, shape index: {}]   ;;  %s569_s3 = inlined_call_operand.vmem [shape: bf16[32,32], index: 3, kind: input, shape index: {}]   ;;  %s570_s5 = inlined_call_operand.vmem [shape: bf16[32,32], index: 5, kind: input, shape index: {}]   ;;  %s571_s2 = inlined_call_operand.vmem [shape: f32[1,32], index: 2, kind: input, shape index: {}]   ;;  %s572_s7 = inlined_call_operand.vmem [shape: bf16[32,8], index: 7, kind: input, shape index: {}]   ;;  %s573_s4 = inlined_call_operand.vmem [shape: f32[1,32], index: 4, kind: input, shape index: {}]   ;;  %s574_s6 = inlined_call_operand.vmem [shape: f32[1,32], index: 6, kind: input, shape index: {}]   ;;  %s575_s8 = inlined_call_operand.vmem [shape: f32[1,8], index: 8, kind: input, shape index: {}]   ;;  %s576_s9 = inlined_call_operand.vmem [shape: f32[2,8], index: 9, kind: output, shape index: {}]  }
   0x1   :  { %402 = vmatprep.subr.bf16.mxu0 %v460_v0  ;;  %v440_v1 = vld [vmem:[%s567_s1] sm:$0xff]   ;;  %410 = vmatprep.mubr.msk.bf16.mxu0 %vm461_vm0, %v460_v0  ;;  %v441_v2 = vld [vmem:[%s567_s1 + $0x8] sm:$0xff]   ;;  %v442_v3 = vld [vmem:[%s567_s1 + $0x10] sm:$0xff]   ;;  %vm363_vm6 = vcmask 58368  }
   0x2   :  { %414 = vmatprep.subr.bf16.mxu1 %v460_v0  ;;  %418 = vmatprep.mubr.msk.bf16.mxu1 %vm461_vm0, %v460_v0  ;;  %v443_v4 = vld [vmem:[%s567_s1 + $0x18] sm:$0xff]   ;;  %v33_v5 = vld [vmem:[%s568_s0] sm:$0x3]  ;;  %v445_v8 = vld [vmem:[%s569_s3 + $0x8] sm:$0xff]  }
   0x3   :  { %403 = vmatpush3.bf16.msra.mxu0 %v440_v1  ;;  %v34_v6 = vpack.c.bf16 %v33_v5, %v33_v5  ;;  %v444_v7 = vld [vmem:[%s569_s3] sm:$0xff]   ;;  %v447_v18 = vld [vmem:[%s570_s5 + $0x8] sm:$0xff]  }
   0x4   :  { %404 = vmatprep.subr.bf16.mxu0 %v460_v0  ;;  %415 = vmatpush3.bf16.msra.mxu1 %v444_v7  ;;  %v369_v9 = vld [vmem:[%s571_s2] ss:$0 sm:$0xff]  ;;  %v449_v28 = vld [vmem:[%s572_s7 + $0x8] sm:$0xff]  }
   0x5   :  { %416 = vmatprep.subr.bf16.mxu1 %v460_v0  ;;  %v446_v16 = vld [vmem:[%s570_s5] sm:$0xff]  }
   0x6   :  { %v448_v19 = vld [vmem:[%s572_s7] sm:$0xff]  }
   0x7   :  { %405 = vmatpush3.bf16.msra.mxu0 %v441_v2  ;;  %v375_v20 = vld [vmem:[%s573_s4] ss:$0 sm:$0xff] }
   0x8   :  { %406 = vmatprep.subr.bf16.mxu0 %v460_v0  ;;  %417 = vmatpush3.bf16.msra.mxu1 %v445_v8  ;;  %v379_v29 = vld [vmem:[%s574_s6] ss:$0 sm:$0xff] }
   0x9   :  { %422 = vmatprep.subr.bf16.mxu1 %v460_v0  ;;  %v383_v37 = vld [vmem:[%s575_s8] ss:$0 sm:$0xff] }
   0xb   :  { %407 = vmatpush3.bf16.msra.mxu0 %v442_v3 }
   0xc   :  { %408 = vmatprep.subr.bf16.mxu0 %v460_v0 }
   0xf   :  { %409 = vmatpush3.bf16.msra.mxu0 %v443_v4 }
  0x10   :  { %430 = vmatprep.subr.bf16.mxu0 %v460_v0 }
  0x12   :  { %411 = vmatmul.mubr.msk.bf16.vlgmr.msra.gmra.mrb[0].mxu0 %vm74_vm1, %v34_v6 }
  0x13   :  { %434 = vmatprep.mubr.msk.bf16.mxu0 %vm461_vm0, %v460_v0  ;;  %431 = vmatpush3.bf16.msra.mxu0 %v448_v19 }
  0x14   :  { %432 = vmatprep.subr.bf16.mxu0 %v460_v0 }
  0x17   :  { %433 = vmatpush3.bf16.msra.mxu0 %v449_v28 }
  0xe5   :  { %v112_v10 = vpop.f32.mrb[0].mxu0 }
  0xe6   :  { %v113_v11 = vadd.f32 %v369_v9, %v112_v10  ;;  %v412_v12 = vpop.f32.mrb[1].mxu0 }
  0xe7   :  { %v115_v13 = vpop.f32.mrb[2].mxu0  ;;  %v359_v12 = vlaneseq }
  0xe8   :  { %v118_v14 = vmax.f32 %v113_v11, 0.0  ;;  %v413_v15 = vpop.f32.mrb[3].mxu0 }
  0xe9   :  { %v360_v13 = vand.u32 127, %v359_v12 }
  0xea   :  { %v119_v17 = vpack.c.bf16 %v118_v14, %v118_v14 }
  0xeb   :  { %vm361_vm5 = vcmp.lt.s32.totalorder %v360_v13, 4 }
  0xec   :  { %419 = vmatmul.mubr.msk.bf16.vlgmr.msra.gmra.mrb[0].mxu1 %vm143_vm2, %v119_v17 }
  0xed   :  { %423 = vmatpush3.bf16.msra.mxu1 %v446_v16  ;;  %426 = vmatprep.mubr.msk.bf16.mxu1 %vm461_vm0, %v460_v0 }
  0xee   :  { %424 = vmatprep.subr.bf16.mxu1 %v460_v0 }
  0xf1   :  { %425 = vmatpush3.bf16.msra.mxu1 %v447_v18 }
 0x1bf   :  { %v181_v21 = vpop.f32.mrb[0].mxu1 }
 0x1c0   :  { %v182_v22 = vadd.f32 %v375_v20, %v181_v21  ;;  %v420_v23 = vpop.f32.mrb[1].mxu1 }
 0x1c1   :  { %v184_v24 = vpop.f32.mrb[2].mxu1 }
 0x1c2   :  { %v187_v25 = vmax.f32 %v182_v22, 0.0  ;;  %v421_v26 = vpop.f32.mrb[3].mxu1 }
 0x1c4   :  { %v188_v27 = vpack.c.bf16 %v187_v25, %v187_v25 }
 0x1c6   :  { %427 = vmatmul.mubr.msk.bf16.vlgmr.msra.gmra.mrb[4].mxu1 %vm143_vm2, %v188_v27 }
 0x299   :  { %v249_v30 = vpop.f32.mrb[4].mxu1 }
 0x29a   :  { %v250_v31 = vadd.f32 %v379_v29, %v249_v30  ;;  %v428_v32 = vpop.f32.mrb[5].mxu1 }
 0x29b   :  { %v252_v33 = vpop.f32.mrb[6].mxu1 }
 0x29c   :  { %v255_v34 = vmax.f32 %v250_v31, 0.0  ;;  %v429_v35 = vpop.f32.mrb[7].mxu1 }
 0x29e   :  { %v256_v36 = vpack.c.bf16 %v255_v34, %v255_v34 }
 0x2a0   :  { %435 = vmatmul.mubr.msk.bf16.vlgmr.msra.gmra.mrb[4].mxu0 %vm143_vm2, %v256_v36 }
 0x373   :  { %v317_v38 = vpop.f32.mrb[4].mxu0 }
 0x374   :  { %v318_v39 = vadd.f32 %v383_v37, %v317_v38  ;;  %v436_v40 = vpop.f32.mrb[5].mxu0 }
 0x375   :  { %v320_v41 = vpop.f32.mrb[6].mxu0 }
 0x376   :  { %v323_v42 = vsub.f32 2.0, %v318_v39  ;;  %v437_v43 = vpop.f32.mrb[7].mxu0 }
 0x378   :  { %v325_v44 = vand.u32 2147483647, %v323_v42  ;;  %v324_v55 = vmax.f32 %v323_v42, 0.0 }
 0x37a   :  { %v326_v45 = vsub.f32 0.0, %v325_v44 }
 0x37c   :  { %v327_v46 = vmul.f32 1.442695, %v326_v45 }
 0x37e   :  { %450 = vpow2.f32 %v327_v46 }
 0x388   :  { %v451_v47 = vpop.eup %450 }
 0x389   :  { %v329_v48 = vadd.f32 1.0, %v451_v47  ;;  %v332_v49 = vmul.f32 -0.5, %v451_v47  ;;  %v335_v51 = vand.u32 2147483647, %v451_v47 }
 0x38b   :  { %452 = vlog2.f32 %v329_v48  ;;  %v333_v50 = vadd.f32 1.0, %v332_v49  ;;  %vm336_vm3 = vcmp.lt.f32.partialorder %v335_v51, 0.0004427343 }
 0x38d   :  { %v334_v54 = vmul.f32 %v451_v47, %v333_v50 }
 0x395   :  { %v453_v52 = vpop.eup %452 }
 0x396   :  { %v331_v53 = vmul.f32 0.6931472, %v453_v52 }
 0x398   :  { %v337_v56 = vsel %vm336_vm3, %v334_v54, %v331_v53 }
 0x399   :  { %v338_v57 = vadd.f32 %v337_v56, %v324_v55 }
 0x39b   :  { %v339_v58 = vsub.f32 2.0, %v338_v57 }
 0x39d   :  { %v387_v59 = vadd.f32 20.0, %v339_v58 }
 0x39f   :  { %v342_v60 = vand.u32 2147483647, %v387_v59  ;;  %v341_v7 = vmax.f32 %v387_v59, 0.0 }
 0x3a1   :  { %v343_v61 = vsub.f32 0.0, %v342_v60 }
 0x3a3   :  { %v344_v62 = vmul.f32 1.442695, %v343_v61 }
 0x3a5   :  { %454 = vpow2.f32 %v344_v62 }
 0x3af   :  { %v455_v63 = vpop.eup %454 }
 0x3b0   :  { %v346_v0 = vadd.f32 1.0, %v455_v63  ;;  %v349_v1 = vmul.f32 -0.5, %v455_v63  ;;  %v352_v3 = vand.u32 2147483647, %v455_v63 }
 0x3b2   :  { %456 = vlog2.f32 %v346_v0  ;;  %v350_v2 = vadd.f32 1.0, %v349_v1  ;;  %vm353_vm4 = vcmp.lt.f32.partialorder %v352_v3, 0.0004427343 }
 0x3b4   :  { %v351_v6 = vmul.f32 %v455_v63, %v350_v2 }
 0x3bc   :  { %v457_v4 = vpop.eup %456 }
 0x3bd   :  { %v348_v5 = vmul.f32 0.6931472, %v457_v4 }
 0x3bf   :  { %v354_v8 = vsel %vm353_vm4, %v351_v6, %v348_v5 }
 0x3c0   :  { %v355_v9 = vadd.f32 %v354_v8, %v341_v7 }
 0x3c2   :  { %v356_v10 = vadd.f32 -20.0, %v355_v9 }
 0x3c4   :  { %v357_v11 = vmul.f32 1.442695, %v356_v10 }
 0x3c6   :  { %458 = vpow2.f32 %v357_v11 }
 0x3d0   :  { %v459_v14 = vpop.eup %458 }
 0x3d1   :  { %v362_v15 = vsel %vm361_vm5, %v318_v39, %v459_v14 }
 0x3d2   :  { %364 = vst.msk [vmem:[%s576_s9] sm:$0x3] %vm363_vm6, %v362_v15 }

</bundles_post_ra>
